<compile_context>
chip_gen: v6e
topology: v6e:2x2x1
jax: 0.10.0
libtpu: 0.0.40
codegen_flags: <defaults>
</compile_context>

<pallas_src>
import functools

import jax
import jax.numpy as jnp
from jax import lax
from jax.experimental import pallas as pl
from jax.experimental.pallas import tpu as pltpu

NUM_FEATURES = 5


def _round_up(x, m):
    return (x + m - 1) // m * m


def _coin_count_kernel(y_ref, out_ref, *, chunk_rows):
    """One grid step: accumulate per-feature sum(y) and sum(y*y) over a tile.

    y_ref   : (F, R, 128) int8 -- batch tile, batch dense on sublanes + lanes
    out_ref : (2, F, 128) f32  -- resident per-chunk partials
                                  [0] = sum(y), [1] = sum(y*y)
    """
    @pl.when(pl.program_id(1) == 0)
    def _():
        out_ref[...] = jnp.zeros_like(out_ref)

    num_feat = y_ref.shape[0]
    n_sub = y_ref.shape[1] // chunk_rows

    def body(i, carry):
        acc_y, acc_sq = carry
        start = pl.multiple_of(i * chunk_rows, chunk_rows)
        yb = y_ref[:, pl.ds(start, chunk_rows), :].astype(jnp.float32)  # (F, CH, 128)
        acc_y = acc_y + jnp.sum(yb, axis=1)          # (F, 128)
        acc_sq = acc_sq + jnp.sum(yb * yb, axis=1)   # (F, 128)
        return acc_y, acc_sq

    zeros = jnp.zeros((num_feat, 128), jnp.float32)
    acc_y, acc_sq = lax.fori_loop(0, n_sub, body, (zeros, zeros))

    out_ref[0] += acc_y
    out_ref[1] += acc_sq


def _log_joint_tables(theta, psi, model_type):
    """Y-independent per-feature log-joint tables (computed in plain JAX)."""
    theta = theta.astype(jnp.float32)
    psi = psi.astype(jnp.float32)

    def log_joint(x, o):
        log_phi1 = theta * x
        if model_type == "MNAR":
            log_phi2 = psi * x * o
        elif model_type == "MCAR":
            log_phi2 = psi * o
        else:
            log_phi2 = jnp.zeros_like(theta)
        return log_phi1 + log_phi2

    obs0 = log_joint(0, 1)                                   # observed, y = 0
    obs1 = log_joint(1, 1)                                   # observed, y = 1
    miss = jnp.logaddexp(log_joint(0, 0), log_joint(1, 0))   # missing branch
    return obs0, obs1, miss


@functools.partial(
    jax.jit,
    static_argnames=("model_type", "tile_rows", "num_chunks", "chunk_rows"))
def coin_mrf_forward(Y, theta, psi, model_type="MNAR", *,
                     tile_rows=4096, num_chunks=2, chunk_rows=32):
    """Pallas forward pass of CoinMRF: -mean_b sum_i log p(y_bi)."""
    B, F = Y.shape
    obs0, obs1, miss = _log_joint_tables(theta, psi, model_type)

    # ---- static tiling arithmetic (rows of 128 lanes each) ----
    m0 = -(-B // 128)                                            # rows needed
    r_rows = _round_up(min(tile_rows, _round_up(m0, chunk_rows)), chunk_rows)
    tiles = -(-m0 // r_rows)
    par_chunks = num_chunks if tiles >= num_chunks else 1        # v7x dual-TC
    tiles_per_chunk = -(-tiles // par_chunks)
    m_rows = par_chunks * tiles_per_chunk * r_rows
    b_pad = m_rows * 128

    # ---- re-layout: (B, F) -> (F, M, 128) int8, zero padded ----
    yt = jnp.transpose(Y).astype(jnp.int8)                       # (F, B)
    if b_pad != B:
        yt = jnp.pad(yt, ((0, 0), (0, b_pad - B)))               # pad y = 0
    y3 = yt.reshape(F, m_rows, 128)

    kernel = functools.partial(_coin_count_kernel, chunk_rows=chunk_rows)

    partials = pl.pallas_call(
        kernel,
        out_shape=jax.ShapeDtypeStruct((par_chunks, 2, F, 128), jnp.float32),
        grid_spec=pltpu.PrefetchScalarGridSpec(
            num_scalar_prefetch=0,
            grid=(par_chunks, tiles_per_chunk),
            in_specs=[pl.BlockSpec(
                (F, r_rows, 128),
                lambda c, r: (0, c * tiles_per_chunk + r, 0))],
            out_specs=pl.BlockSpec((None, 2, F, 128),
                                   lambda c, r: (c, 0, 0, 0)),
        ),
        compiler_params=pltpu.CompilerParams(
            dimension_semantics=("parallel", "arbitrary")),
    )(y3)

    # ---- tiny per-feature combine in the wrapper ----
    sum_y = jnp.sum(partials[:, 0], axis=(0, 2))     # (F,)  sum of y
    sum_sq = jnp.sum(partials[:, 1], axis=(0, 2))    # (F,)  count of nonzero
    n_pos = 0.5 * (sum_sq + sum_y)                   # count of y == 1
    n_neg = 0.5 * (sum_sq - sum_y)                   # count of y == -1
    total = jnp.sum(B * obs0 + n_pos * (obs1 - obs0) + n_neg * (miss - obs0))
    return -total / B


def coin_mrf_reference(Y, theta, psi, model_type="MNAR"):
    """Pure-JAX reference mirroring the PyTorch loop, for validation."""
    obs0, obs1, miss = _log_joint_tables(theta, psi, model_type)
    obs0 = obs0[None, :]
    obs1 = obs1[None, :]
    miss = miss[None, :]
    lp = jnp.where(Y == -1, miss, jnp.where(Y == 1, obs1, obs0))
    return -jnp.mean(jnp.sum(lp, axis=1))


if __name__ == "__main__":
    key = jax.random.PRNGKey(0)
    k_y, k_theta, k_psi, k_y2 = jax.random.split(key, 4)

    # Module __init__ uses zeros of shape (num_features,); use deterministic
    # nonzero values so the kernel computation is actually exercised.
    theta = 0.3 * jax.random.normal(k_theta, (NUM_FEATURES,), dtype=jnp.float32)
    psi = 0.2 * jax.random.normal(k_psi, (NUM_FEATURES,), dtype=jnp.float32)

    # Small case consistent with the module: batch=8, features=5, Y in {-1,0,1}.
    Y = jax.random.randint(k_y, (8, NUM_FEATURES), -1, 2, dtype=jnp.int32)
    for model_type in ("MNAR", "MCAR"):
        got = jax.block_until_ready(
            coin_mrf_forward(Y, theta, psi, model_type=model_type))
        want = coin_mrf_reference(Y, theta, psi, model_type)
        assert jnp.allclose(got, want, atol=1e-5, rtol=1e-5), (model_type, got, want)

    # Larger case with small tiles: exercises the multi-step reduction axis,
    # the two-chunk "parallel" axis (v7x dual-TC path), and the zero padding.
    Y2 = jax.random.randint(k_y2, (20000, NUM_FEATURES), -1, 2, dtype=jnp.int32)
    want2 = coin_mrf_reference(Y2, theta, psi, "MNAR")
    got2 = jax.block_until_ready(
        coin_mrf_forward(Y2, theta, psi, model_type="MNAR", tile_rows=32))
    assert jnp.allclose(got2, want2, atol=1e-4, rtol=1e-4), (got2, want2)

    # Same data through the default (large-tile, single-step) path.
    got3 = jax.block_until_ready(
        coin_mrf_forward(Y2, theta, psi, model_type="MNAR"))
    assert jnp.allclose(got3, want2, atol=1e-4, rtol=1e-4), (got3, want2)

    print("KERNEL_OK")
</pallas_src>

<mosaic_0001>
module attributes {stable_mosaic.version = 11 : i64} {
  func.func @_coin_count_kernel(%arg0: i32, %arg1: i32, %arg2: memref<5x32x128xi8, #tpu.memory_space<vmem>>, %arg3: memref<1x2x5x128xf32, #tpu.memory_space<vmem>>) attributes {dimension_semantics = [#tpu.dimension_semantics<parallel>, #tpu.dimension_semantics<arbitrary>], iteration_bounds = array<i64: 1, 1>, scalar_prefetch = 0 : i64, scratch_operands = 0 : i64, tpu.core_type = #tpu.core_type<tc>, window_params = [{transform_indices = @transform_0, window_bounds = array<i64: 5, 32, 128>}, {transform_indices = @transform_1, window_bounds = array<i64: 1, 2, 5, 128>}]} {
    %c0_i32 = arith.constant 0 : i32
    %0 = arith.cmpi eq, %arg1, %c0_i32 : i32
    %1 = arith.extui %0 : i1 to i32
    %c0_i32_0 = arith.constant 0 : i32
    %2 = arith.cmpi ne, %1, %c0_i32_0 : i32
    scf.if %2 {
      %cst_20 = arith.constant 0.000000e+00 : f32
      %26 = vector.broadcast %cst_20 : f32 to vector<2x5x128xf32>
      %c0_21 = arith.constant 0 : index
      %c0_22 = arith.constant 0 : index
      %c0_23 = arith.constant 0 : index
      %c0_24 = arith.constant 0 : index
      %27 = vector.load %arg3[%c0_21, %c0_22, %c0_23, %c0_24] : memref<1x2x5x128xf32, #tpu.memory_space<vmem>>, vector<1x2x5x128xf32>
      %28 = vector.shape_cast %27 : vector<1x2x5x128xf32> to vector<2x5x128xf32>
      %29 = vector.shape_cast %26 : vector<2x5x128xf32> to vector<1x2x5x128xf32>
      tpu.vector_store %arg3[%c0_21, %c0_22, %c0_23, %c0_24], %29 {strides = array<i32>} : memref<1x2x5x128xf32, #tpu.memory_space<vmem>>, vector<1x2x5x128xf32>,
    } else {
    }
    %cst = arith.constant 0.000000e+00 : f32
    %3 = vector.broadcast %cst : f32 to vector<5x128xf32>
    %c0_i32_1 = arith.constant 0 : i32
    %c32_i32 = arith.constant 32 : i32
    %4 = arith.muli %c0_i32_1, %c32_i32 : i32
    %5 = tpu.assume_multiple %4, 32 : i32
    %c0 = arith.constant 0 : index
    %6 = arith.index_cast %5 : i32 to index
    %c0_2 = arith.constant 0 : index
    %7 = vector.load %arg2[%c0, %6, %c0_2] : memref<5x32x128xi8, #tpu.memory_space<vmem>>, vector<5x32x128xi8>
    %8 = arith.sitofp %7 : vector<5x32x128xi8> to vector<5x32x128xf32>
    %cst_3 = arith.constant dense<0.000000e+00> : vector<5x128xf32>
    %9 = vector.multi_reduction <add>, %8, %cst_3 [1] : vector<5x32x128xf32> to vector<5x128xf32>
    %10 = arith.addf %3, %9 : vector<5x128xf32>
    %11 = arith.mulf %8, %8 : vector<5x32x128xf32>
    %cst_4 = arith.constant dense<0.000000e+00> : vector<5x128xf32>
    %12 = vector.multi_reduction <add>, %11, %cst_4 [1] : vector<5x32x128xf32> to vector<5x128xf32>
    %13 = arith.addf %3, %12 : vector<5x128xf32>
    %c1_i32 = arith.constant 1 : i32
    %c0_5 = arith.constant 0 : index
    %c0_6 = arith.constant 0 : index
    %c0_7 = arith.constant 0 : index
    %c0_8 = arith.constant 0 : index
    %14 = vector.load %arg3[%c0_5, %c0_6, %c0_7, %c0_8] : memref<1x2x5x128xf32, #tpu.memory_space<vmem>>, vector<1x1x5x128xf32>
    %15 = vector.shape_cast %14 : vector<1x1x5x128xf32> to vector<5x128xf32>
    %16 = arith.addf %15, %10 : vector<5x128xf32>
    %c0_9 = arith.constant 0 : index
    %c0_10 = arith.constant 0 : index
    %c0_11 = arith.constant 0 : index
    %c0_12 = arith.constant 0 : index
    %17 = vector.load %arg3[%c0_9, %c0_10, %c0_11, %c0_12] : memref<1x2x5x128xf32, #tpu.memory_space<vmem>>, vector<1x1x5x128xf32>
    %18 = vector.shape_cast %17 : vector<1x1x5x128xf32> to vector<5x128xf32>
    %19 = vector.shape_cast %16 : vector<5x128xf32> to vector<1x1x5x128xf32>
    tpu.vector_store %arg3[%c0_9, %c0_10, %c0_11, %c0_12], %19 {strides = array<i32>} : memref<1x2x5x128xf32, #tpu.memory_space<vmem>>, vector<1x1x5x128xf32>,
    %c0_13 = arith.constant 0 : index
    %c1 = arith.constant 1 : index
    %c0_14 = arith.constant 0 : index
    %c0_15 = arith.constant 0 : index
    %20 = vector.load %arg3[%c0_13, %c1, %c0_14, %c0_15] : memref<1x2x5x128xf32, #tpu.memory_space<vmem>>, vector<1x1x5x128xf32>
    %21 = vector.shape_cast %20 : vector<1x1x5x128xf32> to vector<5x128xf32>
    %22 = arith.addf %21, %13 : vector<5x128xf32>
    %c0_16 = arith.constant 0 : index
    %c1_17 = arith.constant 1 : index
    %c0_18 = arith.constant 0 : index
    %c0_19 = arith.constant 0 : index
    %23 = vector.load %arg3[%c0_16, %c1_17, %c0_18, %c0_19] : memref<1x2x5x128xf32, #tpu.memory_space<vmem>>, vector<1x1x5x128xf32>
    %24 = vector.shape_cast %23 : vector<1x1x5x128xf32> to vector<5x128xf32>
    %25 = vector.shape_cast %22 : vector<5x128xf32> to vector<1x1x5x128xf32>
    tpu.vector_store %arg3[%c0_16, %c1_17, %c0_18, %c0_19], %25 {strides = array<i32>} : memref<1x2x5x128xf32, #tpu.memory_space<vmem>>, vector<1x1x5x128xf32>,
    return
  }
  func.func @transform_0(%arg0: i32, %arg1: i32) -> (i32, i32, i32) {
    %c1_i32 = arith.constant 1 : i32
    %0 = arith.muli %arg0, %c1_i32 : i32
    %1 = arith.addi %0, %arg1 : i32
    %c0_i32 = arith.constant 0 : i32
    %c0_i32_0 = arith.constant 0 : i32
    %c0_i32_1 = arith.constant 0 : i32
    return %c0_i32, %1, %c0_i32_0 : i32, i32, i32
  }
  func.func @transform_1(%arg0: i32, %arg1: i32) -> (i32, i32, i32, i32) {
    %c0_i32 = arith.constant 0 : i32
    %c0_i32_0 = arith.constant 0 : i32
    %c0_i32_1 = arith.constant 0 : i32
    %c0_i32_2 = arith.constant 0 : i32
    return %arg0, %c0_i32, %c0_i32_0, %c0_i32_1 : i32, i32, i32, i32
  }
}

</mosaic_0001>

<bundles_post_ra>
// kernel: coin_mrf_forward.1
= control target key start
LH: loop header
LB: loop body
LE: loop exit
PB: predicated region body
PF: predicated region fallthrough
CT: control target
= control target key end

     0   :  { %v240_v0 = vmov 0.0   ;;  %vm202_vm0 = vcmask 1041409   ;;  %vm204_vm1 = vcmask 1042434   ;;  %vm206_vm2 = vcmask 1043459   ;;  %s297_s1 = inlined_call_operand.vmem [shape: f32[1,2,5,128], index: 1, kind: output, shape index: {}]   ;;  %s298_s0 = inlined_call_operand.vmem [shape: s8[5,32,128], index: 0, kind: input, shape index: {}]  }
   0x1   :  { %29 = vst [vmem:[%s297_s1] sm:$0x1f] %v240_v0  ;;  %30 = vst [vmem:[%s297_s1 + $0x8] sm:$0x1f] %v240_v0  ;;  %v31_v1 = vld [vmem:[%s298_s0] sm:$0xff]  ;;  %v32_v2 = vld [vmem:[%s298_s0 + $0x8] sm:$0xff]  ;;  %vm208_vm3 = vcmask 1044484  }
   0x2   :  { %v33_v3 = vld [vmem:[%s298_s0 + $0x10] sm:$0xff]  ;;  %v34_v4 = vld [vmem:[%s298_s0 + $0x18] sm:$0xff]  ;;  %v36_v5 = vunpack.c.0.s8 %v31_v1  ;;  %v37_v6 = vunpack.c.1.s8 %v31_v1  ;;  %v38_v7 = vunpack.c.2.s8 %v31_v1  ;;  %v35_v8 = vld [vmem:[%s298_s0 + $0x20] sm:$0xff]  ;;  %v39_v9 = vunpack.c.3.s8 %v31_v1 }
   0x3   :  { %v40_v10 = vunpack.c.0.s8 %v32_v2  ;;  %v41_v11 = vunpack.c.1.s8 %v32_v2  ;;  %v42_v12 = vunpack.c.2.s8 %v32_v2  ;;  %v43_v13 = vunpack.c.3.s8 %v32_v2 }
   0x4   :  { %v44_v14 = vunpack.c.0.s8 %v33_v3  ;;  %v45_v15 = vunpack.c.1.s8 %v33_v3  ;;  %v46_v16 = vunpack.c.2.s8 %v33_v3  ;;  %v47_v17 = vunpack.c.3.s8 %v33_v3 }
   0x5   :  { %v48_v18 = vunpack.c.0.s8 %v34_v4  ;;  %v49_v19 = vunpack.c.1.s8 %v34_v4  ;;  %v50_v20 = vunpack.c.2.s8 %v34_v4  ;;  %v51_v21 = vunpack.c.3.s8 %v34_v4 }
   0x6   :  { %v52_v22 = vunpack.c.0.s8 %v35_v8  ;;  %v53_v23 = vunpack.c.1.s8 %v35_v8  ;;  %v54_v24 = vunpack.c.2.s8 %v35_v8  ;;  %v55_v25 = vunpack.c.3.s8 %v35_v8 }
   0x7   :  { %v56_v26 = vcvt.s32.f32 %v36_v5  ;;  %v57_v27 = vcvt.s32.f32 %v37_v6  ;;  %v58_v28 = vcvt.s32.f32 %v38_v7  ;;  %v59_v29 = vcvt.s32.f32 %v39_v9 }
   0x8   :  { %v60_v30 = vcvt.s32.f32 %v40_v10  ;;  %v61_v31 = vcvt.s32.f32 %v41_v11  ;;  %v62_v32 = vcvt.s32.f32 %v42_v12  ;;  %v63_v33 = vcvt.s32.f32 %v43_v13 }
   0x9   :  { %v64_v34 = vcvt.s32.f32 %v44_v14  ;;  %v65_v35 = vcvt.s32.f32 %v45_v15  ;;  %v66_v36 = vcvt.s32.f32 %v46_v16  ;;  %v67_v37 = vcvt.s32.f32 %v47_v17 }
   0xa   :  { %v68_v38 = vcvt.s32.f32 %v48_v18  ;;  %v69_v39 = vcvt.s32.f32 %v49_v19  ;;  %v70_v40 = vcvt.s32.f32 %v50_v20  ;;  %v71_v41 = vcvt.s32.f32 %v51_v21 }
   0xb   :  { %v72_v42 = vcvt.s32.f32 %v52_v22  ;;  %v73_v43 = vcvt.s32.f32 %v53_v23  ;;  %v74_v44 = vcvt.s32.f32 %v54_v24  ;;  %v76_v45 = vadd.f32 %v57_v27, %v56_v26 }
   0xc   :  { %v85_v46 = vadd.f32 %v61_v31, %v60_v30  ;;  %v94_v47 = vadd.f32 %v65_v35, %v64_v34  ;;  %v103_v48 = vadd.f32 %v69_v39, %v68_v38  ;;  %v272_v49 = vcvt.s32.f32 %v55_v25 }
   0xd   :  { %v112_v50 = vadd.f32 %v73_v43, %v72_v42  ;;  %v126_v51 = vmul.f32 %v56_v26, %v56_v26  ;;  %v127_v52 = vmul.f32 %v57_v27, %v57_v27  ;;  %v77_v53 = vadd.f32 %v76_v45, %v58_v28 }
   0xe   :  { %v86_v54 = vadd.f32 %v85_v46, %v62_v32  ;;  %v95_v55 = vadd.f32 %v94_v47, %v66_v36  ;;  %v104_v56 = vadd.f32 %v103_v48, %v70_v40  ;;  %v128_v58 = vmul.f32 %v58_v28, %v58_v28 }
   0xf   :  { %v113_v57 = vadd.f32 %v112_v50, %v74_v44  ;;  %v129_v59 = vmul.f32 %v59_v29, %v59_v29  ;;  %v130_v60 = vmul.f32 %v60_v30, %v60_v30  ;;  %v78_v61 = vadd.f32 %v77_v53, %v59_v29 }
  0x10   :  { %v87_v62 = vadd.f32 %v86_v54, %v63_v33  ;;  %v96_v63 = vadd.f32 %v95_v55, %v67_v37  ;;  %v105_v0 = vadd.f32 %v104_v56, %v71_v41  ;;  %v131_v2 = vmul.f32 %v61_v31, %v61_v31 }
  0x11   :  { %v114_v1 = vadd.f32 %v113_v57, %v272_v49  ;;  %v132_v3 = vmul.f32 %v62_v32, %v62_v32  ;;  %v133_v4 = vmul.f32 %v63_v33, %v63_v33  ;;  %v79_v5 = vrot.slane %v78_v61, 4 }
  0x12   :  { %v88_v6 = vrot.slane %v87_v62, 4  ;;  %v97_v7 = vrot.slane %v96_v63, 4  ;;  %v106_v8 = vrot.slane %v105_v0, 4  ;;  %v134_v10 = vmul.f32 %v64_v34, %v64_v34 }
  0x13   :  { %v115_v9 = vrot.slane %v114_v1, 4  ;;  %v135_v11 = vmul.f32 %v65_v35, %v65_v35  ;;  %v136_v12 = vmul.f32 %v66_v36, %v66_v36  ;;  %v80_v13 = vadd.f32 %v79_v5, %v78_v61 }
  0x14   :  { %v89_v14 = vadd.f32 %v88_v6, %v87_v62  ;;  %v98_v15 = vadd.f32 %v97_v7, %v96_v63  ;;  %v107_v16 = vadd.f32 %v106_v8, %v105_v0  ;;  %v137_v18 = vmul.f32 %v67_v37, %v67_v37 }
  0x15   :  { %v116_v17 = vadd.f32 %v115_v9, %v114_v1  ;;  %v138_v19 = vmul.f32 %v68_v38, %v68_v38  ;;  %v139_v20 = vmul.f32 %v69_v39, %v69_v39  ;;  %v81_v21 = vrot.slane %v80_v13, 2 }
  0x16   :  { %v90_v22 = vrot.slane %v89_v14, 2  ;;  %v99_v23 = vrot.slane %v98_v15, 2  ;;  %v108_v24 = vrot.slane %v107_v16, 2  ;;  %v140_v26 = vmul.f32 %v70_v40, %v70_v40 }
  0x17   :  { %v117_v25 = vrot.slane %v116_v17, 2  ;;  %v141_v27 = vmul.f32 %v71_v41, %v71_v41  ;;  %v142_v28 = vmul.f32 %v72_v42, %v72_v42  ;;  %v82_v29 = vadd.f32 %v81_v21, %v80_v13 }
  0x18   :  { %v91_v30 = vadd.f32 %v90_v22, %v89_v14  ;;  %v100_v31 = vadd.f32 %v99_v23, %v98_v15  ;;  %v109_v32 = vadd.f32 %v108_v24, %v107_v16  ;;  %v143_v34 = vmul.f32 %v73_v43, %v73_v43 }
  0x19   :  { %v118_v33 = vadd.f32 %v117_v25, %v116_v17  ;;  %v144_v35 = vmul.f32 %v74_v44, %v74_v44  ;;  %v146_v36 = vadd.f32 %v127_v52, %v126_v51  ;;  %v83_v37 = vrot.slane %v82_v29, 1 }
  0x1a   :  { %v92_v38 = vrot.slane %v91_v30, 1  ;;  %v101_v39 = vrot.slane %v100_v31, 1  ;;  %v110_v45 = vrot.slane %v109_v32, 1  ;;  %v155_v48 = vadd.f32 %v131_v2, %v130_v60 }
  0x1b   :  { %v119_v46 = vrot.slane %v118_v33, 1  ;;  %v147_v47 = vadd.f32 %v146_v36, %v128_v58  ;;  %v164_v50 = vadd.f32 %v135_v11, %v134_v10  ;;  %v84_v53 = vadd.f32 %v83_v37, %v82_v29  ;;  %v196_v58 = vld [vmem:[%s297_s1] sm:$0x1f]  ;;  %v237_v36 = vld [vmem:[%s297_s1 + $0x8] sm:$0x1f] }
  0x1c   :  { %v93_v40 = vadd.f32 %v92_v38, %v91_v30  ;;  %v102_v41 = vadd.f32 %v101_v39, %v100_v31  ;;  %v111_v42 = vadd.f32 %v110_v45, %v109_v32  ;;  %v156_v56 = vadd.f32 %v155_v48, %v132_v3 }
  0x1d   :  { %v120_v54 = vadd.f32 %v119_v46, %v118_v33  ;;  %v148_v55 = vadd.f32 %v147_v47, %v129_v59  ;;  %v165_v57 = vadd.f32 %v164_v50, %v136_v12  ;;  %v145_v44 = vmul.f32 %v272_v49, %v272_v49 }
  0x1e   :  { %v203_v43 = vsel %vm202_vm0, %v93_v40, %v84_v53  ;;  %v173_v51 = vadd.f32 %v139_v20, %v138_v19  ;;  %v182_v52 = vadd.f32 %v143_v34, %v142_v28  ;;  %v157_v62 = vadd.f32 %v156_v56, %v133_v4 }
  0x1f   :  { %v205_v60 = vsel %vm204_vm1, %v102_v41, %v203_v43  ;;  %v149_v61 = vrot.slane %v148_v55, 4  ;;  %v166_v63 = vadd.f32 %v165_v57, %v137_v18 }
  0x20   :  { %v207_v59 = vsel %vm206_vm2, %v111_v42, %v205_v60  ;;  %v174_v0 = vadd.f32 %v173_v51, %v140_v26  ;;  %v183_v1 = vadd.f32 %v182_v52, %v144_v35  ;;  %v158_v5 = vrot.slane %v157_v62, 4 }
  0x21   :  { %v209_v2 = vsel %vm208_vm3, %v120_v54, %v207_v59  ;;  %v150_v3 = vadd.f32 %v149_v61, %v148_v55  ;;  %v167_v49 = vrot.slane %v166_v63, 4 }
  0x22   :  { %v211_v6 = vadd.f32 %v209_v2, %v196_v58  ;;  %v175_v7 = vadd.f32 %v174_v0, %v141_v27  ;;  %v184_v8 = vadd.f32 %v183_v1, %v145_v44  ;;  %v159_v10 = vadd.f32 %v158_v5, %v157_v62 }
  0x23   :  { %v151_v9 = vrot.slane %v150_v3, 2  ;;  %v168_v11 = vadd.f32 %v167_v49, %v166_v63 }
  0x24   :  { %212 = vst [vmem:[%s297_s1] sm:$0x1f] %v211_v6  ;;  %v176_v4 = vrot.slane %v175_v7, 4  ;;  %v185_v12 = vrot.slane %v184_v8, 4  ;;  %v160_v14 = vrot.slane %v159_v10, 2 }
  0x25   :  { %v152_v13 = vadd.f32 %v151_v9, %v150_v3  ;;  %v169_v15 = vrot.slane %v168_v11, 2 }
  0x26   :  { %v177_v16 = vadd.f32 %v176_v4, %v175_v7  ;;  %v186_v17 = vadd.f32 %v185_v12, %v184_v8  ;;  %v161_v19 = vadd.f32 %v160_v14, %v159_v10 }
  0x27   :  { %v153_v18 = vrot.slane %v152_v13, 1  ;;  %v170_v20 = vadd.f32 %v169_v15, %v168_v11 }
  0x28   :  { %v178_v21 = vrot.slane %v177_v16, 2  ;;  %v187_v22 = vrot.slane %v186_v17, 2  ;;  %v162_v24 = vrot.slane %v161_v19, 1 }
  0x29   :  { %v154_v23 = vadd.f32 %v153_v18, %v152_v13  ;;  %v171_v25 = vrot.slane %v170_v20, 1 }
  0x2a   :  { %v179_v26 = vadd.f32 %v178_v21, %v177_v16  ;;  %v188_v27 = vadd.f32 %v187_v22, %v186_v17  ;;  %v163_v28 = vadd.f32 %v162_v24, %v161_v19 }
  0x2b   :  { %v172_v29 = vadd.f32 %v171_v25, %v170_v20 }
  0x2c   :  { %v180_v30 = vrot.slane %v179_v26, 1  ;;  %v189_v31 = vrot.slane %v188_v27, 1  ;;  %v220_v32 = vsel %vm202_vm0, %v163_v28, %v154_v23 }
  0x2d   :  { %v221_v35 = vsel %vm204_vm1, %v172_v29, %v220_v32 }
  0x2e   :  { %v181_v33 = vadd.f32 %v180_v30, %v179_v26  ;;  %v190_v34 = vadd.f32 %v189_v31, %v188_v27 }
  0x30   :  { %v222_v37 = vsel %vm206_vm2, %v181_v33, %v221_v35 }
  0x31   :  { %v223_v38 = vsel %vm208_vm3, %v190_v34, %v222_v37 }
  0x32   :  { %v225_v39 = vadd.f32 %v237_v36, %v223_v38 }
  0x34   :  { %238 = vst [vmem:[%s297_s1 + $0x8] sm:$0x1f] %v225_v39 }

</bundles_post_ra>
